<compile_context>
chip_gen: v6e
topology: v6e:2x2x1
jax: 0.10.0
libtpu: 0.0.40
codegen_flags: <defaults>
</compile_context>

<pallas_src>
import jax
import jax.numpy as jnp
from jax import lax
from jax.experimental import pallas as pl
from jax.experimental.pallas import tpu as pltpu

HIDDEN = 20

# ---- tiling policy ---------------------------------------------------------
_MAX_TILE = 8192             # absolute cap on rows per grid step
_OBS_VMEM_BUDGET = 24 << 20  # VMEM budget for the pipelined obs stream
_EPILOGUE_CHUNK = 512        # lanes processed per epilogue chunk
_VMEM_LIMIT_CAP = 48 << 20   # keep headroom on v7x's 64 MiB physical VMEM


def _round_up(x, m):
    return -(-x // m) * m


def _pick_tile(batch, obs_dim, itemsize):
    """Rows per grid step.

    The kernel is HBM / per-grid-step-overhead bound, so pick the largest
    multiple-of-128 divisor of `batch` that fits a cross-generation VMEM
    budget (the obs tile is lane-padded to 128, so per-buffer bytes are
    roughly tb * 128 * itemsize for obs_dim <= 128).  Small batches get a
    single whole-batch block.
    """
    lane_bytes = _round_up(max(obs_dim, 1), 128) * itemsize
    n_buf = 3 if obs_dim <= 64 else 2           # matches Buffered(3) policy
    cap = (_OBS_VMEM_BUDGET // (n_buf * lane_bytes)) // 128 * 128
    cap = max(128, min(_MAX_TILE, cap))
    if batch <= cap:
        return batch                            # one whole-batch block
    divs = [d for d in range(128, cap + 1, 128) if batch % d == 0]
    if not divs:
        # No lane-aligned divisor: fall back to a partial last block
        # (Pallas masks the out-of-range lanes of the final output write).
        return cap
    best = divs[-1]
    # v7x megacore (2 TensorCores): prefer an even grid if it costs at most
    # 2x tile size; harmless on single-TC v5e/v6e.
    if (batch // best) % 2 == 1:
        even = [d for d in divs if (batch // d) % 2 == 0 and 2 * d >= best]
        if even:
            best = even[-1]
    return best


def _epilogue_chunk(tb):
    """Lane-chunk for the post-matmul epilogue: keeps the live (HIDDEN, chunk)
    f32 intermediate at <= ~12 vregs instead of 3*(tb/128)."""
    if tb <= 1024:
        return tb
    for c in (_EPILOGUE_CHUNK, 256, 128):
        if tb % c == 0:
            return c
    return tb


def _vmem_limit(tb, obs_dim, itemsize, n_buf):
    obs_buf = n_buf * _round_up(tb, 16) * _round_up(obs_dim, 128) * itemsize
    out_buf = 2 * 8 * _round_up(tb, 128) * 4
    par_buf = 2 * _round_up(HIDDEN, 16) * _round_up(obs_dim + 2, 128) * itemsize
    needed = obs_buf + out_buf + par_buf + (4 << 20)
    # Above every generation's scoped default (16/32/32 MiB), below v7x's
    # 64 MiB physical VMEM.
    return int(min(_VMEM_LIMIT_CAP, max(needed, 32 << 20)))


# ---- kernel -----------------------------------------------------------------
def _make_kernel(obs_dim, chunk, n_chunks):
    def kernel(x_ref, params_ref, b2_ref, o_ref):
        # x_ref:      (tb, obs_dim)        obs tile, native dtype (f32 or bf16)
        # params_ref: (HIDDEN, obs_dim+2)  packed [W1^T | b1 | w2], obs dtype
        # b2_ref:     (1,) f32 in SMEM
        # o_ref:      (1, tb) f32, batch on lanes (lane-dense stores)
        w1t = params_ref[:, 0:obs_dim]                                  # (H, D)
        b1 = params_ref[:, obs_dim:obs_dim + 1].astype(jnp.float32)     # (H, 1)
        w2 = params_ref[:, obs_dim + 1:obs_dim + 2].astype(jnp.float32)  # (H, 1)
        b2 = b2_ref[0]
        for c in range(n_chunks):  # static chunking bounds epilogue live ranges
            lo = c * chunk
            hi = lo + chunk
            # h = W1^T @ x_chunk^T -> (HIDDEN, chunk): both operands contract
            # their minor (obs_dim) axis, so batch stays on lanes and the
            # tanh / w2-reduce / store below are lane-dense.  No f32 upcast of
            # x: the MXU takes bf16 x bf16 -> f32 natively.
            # (If profiling on large obs_dim shows a vxpose relayout of the x
            #  tile, transpose the 20-wide side instead.)
            h = lax.dot_general(
                w1t, x_ref[lo:hi, :],
                dimension_numbers=(((1,), (1,)), ((), ())),
                preferred_element_type=jnp.float32)
            h = jnp.tanh(h + b1)                              # EUP, lane-dense
            # Linear(20 -> 1): VPU multiply + sublane (XLU) reduction instead
            # of an almost-empty MXU pass.
            v = jnp.sum(h * w2, axis=0, keepdims=True) + b2   # (1, chunk)
            o_ref[:, lo:hi] = v
    return kernel


# ---- wrapper ----------------------------------------------------------------
def value_function(obs, w1, b1, w2, b2, *, tb=None):
    """obs: (B, obs_dim) f32 or bf16 -> (B,) f32 values.

    Equivalent to nn.Sequential(Linear(obs_dim, 20), Tanh(), Linear(20, 1))
    followed by .squeeze(-1).  w1 is expected in (obs_dim, HIDDEN) layout
    (i.e. the transpose of the PyTorch Linear weight).
    """
    B, obs_dim = obs.shape
    if obs.dtype != jnp.float32 and obs.dtype != jnp.bfloat16:
        obs = obs.astype(jnp.float32)
    compute_dtype = obs.dtype       # bf16 obs -> bf16 weights, f32 accumulation

    if tb is None:
        tb = _pick_tile(B, obs_dim, obs.dtype.itemsize)
    tb = int(tb)
    if tb != B and (tb <= 0 or tb > B or tb % 128 != 0):
        raise ValueError(
            f"tb={tb}: the tiled path needs 0 < tb <= B={B} and tb % 128 == 0 "
            "(lane-dense output blocks); tb == B is always allowed")
    grid = pl.cdiv(B, tb)
    chunk = _epilogue_chunk(tb)
    n_chunks = tb // chunk

    # packed parameter block [W1^T | b1 | w2] -> one small DMA stream
    w1 = jnp.asarray(w1, jnp.float32)
    if w1.shape != (obs_dim, HIDDEN):
        raise ValueError(f"w1 must have shape ({obs_dim}, {HIDDEN}); got {w1.shape}")
    params = jnp.concatenate(
        [w1.T,
         jnp.asarray(b1, jnp.float32).reshape(HIDDEN, 1),
         jnp.asarray(w2, jnp.float32).reshape(HIDDEN, 1)],
        axis=1).astype(compute_dtype)
    b2_arr = jnp.asarray(b2, jnp.float32).reshape(1)

    # obs stream: triple-buffer small tiles (latency-bound DMAs) on long grids
    deep_buffer = grid >= 3 and obs_dim <= 64
    obs_index = lambda i: (i, 0)
    obs_spec = pl.BlockSpec((tb, obs_dim), obs_index)
    if deep_buffer:
        try:
            obs_spec = pl.BlockSpec((tb, obs_dim), obs_index,
                                    pipeline_mode=pl.Buffered(3))
        except TypeError:   # BlockSpec without pipeline_mode support
            deep_buffer = False
    n_buf = 3 if deep_buffer else 2

    cost = pl.CostEstimate(
        flops=2 * B * obs_dim * HIDDEN + 3 * B * HIDDEN,
        transcendentals=B * HIDDEN,
        bytes_accessed=B * obs_dim * obs.dtype.itemsize
        + params.size * params.dtype.itemsize + 4 + B * 4,
    )

    out = pl.pallas_call(
        _make_kernel(obs_dim, chunk, n_chunks),
        out_shape=jax.ShapeDtypeStruct((1, B), jnp.float32),
        grid_spec=pl.GridSpec(
            grid=(grid,),
            in_specs=[
                obs_spec,
                pl.BlockSpec((HIDDEN, obs_dim + 2), lambda i: (0, 0)),
                pl.BlockSpec(memory_space=pltpu.MemorySpace.SMEM),
            ],
            out_specs=pl.BlockSpec((1, tb), lambda i: (0, i)),
        ),
        compiler_params=pltpu.CompilerParams(
            dimension_semantics=("parallel",),
            vmem_limit_bytes=_vmem_limit(tb, obs_dim, obs.dtype.itemsize, n_buf),
        ),
        cost_estimate=cost,
    )(obs, params, b2_arr)

    return out.reshape(B)   # == .squeeze(-1)


# ---- reference / init -------------------------------------------------------
def _reference(obs, w1, b1, w2, b2):
    x = jnp.asarray(obs, jnp.float32)
    h = jnp.tanh(jnp.dot(x, jnp.asarray(w1, jnp.float32),
                         precision=lax.Precision.HIGHEST)
                 + jnp.asarray(b1, jnp.float32))
    v = jnp.dot(h, jnp.asarray(w2, jnp.float32),
                precision=lax.Precision.HIGHEST) + jnp.asarray(b2, jnp.float32)
    return v[:, 0]


def init_params(key, obs_dim):
    """Deterministic synthetic init (PyTorch-Linear-style uniform bounds)."""
    k1, k2, k3, k4 = jax.random.split(key, 4)
    lim1 = 1.0 / jnp.sqrt(obs_dim)
    lim2 = 1.0 / jnp.sqrt(HIDDEN)
    w1 = jax.random.uniform(k1, (obs_dim, HIDDEN), jnp.float32, -lim1, lim1)
    b1 = jax.random.uniform(k2, (HIDDEN,), jnp.float32, -lim1, lim1)
    w2 = jax.random.uniform(k3, (HIDDEN, 1), jnp.float32, -lim2, lim2)
    b2 = jax.random.uniform(k4, (1,), jnp.float32, -lim2, lim2)
    return w1, b1, w2, b2


if __name__ == "__main__":
    key = jax.random.PRNGKey(0)
    k_obs, k_par = jax.random.split(key)
    OBS_DIM = 16
    w1, b1, w2, b2 = init_params(k_par, OBS_DIM)

    # 1) small whole-batch block (typical module-sized call)
    obs = jax.random.normal(k_obs, (8, OBS_DIM), jnp.float32)
    out = jax.block_until_ready(value_function(obs, w1, b1, w2, b2))
    assert out.shape == (8,)
    assert jnp.allclose(out, _reference(obs, w1, b1, w2, b2), atol=5e-3, rtol=5e-3)

    # 2) tiled lane-dense path: grid of 4 steps, Buffered(3) obs stream
    obs2 = jax.random.normal(k_obs, (2048, OBS_DIM), jnp.float32)
    out2 = jax.block_until_ready(value_function(obs2, w1, b1, w2, b2, tb=512))
    assert out2.shape == (2048,)
    assert jnp.allclose(out2, _reference(obs2, w1, b1, w2, b2), atol=5e-3, rtol=5e-3)

    # 3) bf16 obs, auto tile (single 4096-row block, chunked epilogue)
    obs3 = jax.random.normal(k_obs, (4096, OBS_DIM), jnp.float32).astype(jnp.bfloat16)
    out3 = jax.block_until_ready(value_function(obs3, w1, b1, w2, b2))
    w1b = w1.astype(jnp.bfloat16).astype(jnp.float32)
    b1b = b1.astype(jnp.bfloat16).astype(jnp.float32)
    w2b = w2.astype(jnp.bfloat16).astype(jnp.float32)
    ref3 = _reference(obs3.astype(jnp.float32), w1b, b1b, w2b, b2)
    assert out3.shape == (4096,)
    assert jnp.allclose(out3, ref3, atol=3e-2, rtol=3e-2)

    print("KERNEL_OK")
</pallas_src>

<mosaic_0001>
module attributes {stable_mosaic.version = 11 : i64} {
  func.func @kernel(%arg0: i32, %arg1: memref<8x16xf32, #tpu.memory_space<vmem>>, %arg2: memref<20x18xf32, #tpu.memory_space<vmem>>, %arg3: memref<1xf32, #tpu.memory_space<smem>>, %arg4: memref<1x8xf32, #tpu.memory_space<vmem>>) attributes {dimension_semantics = [#tpu.dimension_semantics<parallel>], iteration_bounds = array<i64: 1>, scalar_prefetch = 0 : i64, scratch_operands = 0 : i64, tpu.core_type = #tpu.core_type<tc>, window_params = [{transform_indices = @transform_0, window_bounds = array<i64: 8, 16>}, {pipeline_mode = #tpu.pipeline_mode<synchronous>, transform_indices = @transform_1, window_bounds = array<i64: 20, 18>}, {transform_indices = @transform_2, window_bounds = array<i64: 1>}, {transform_indices = @transform_3, window_bounds = array<i64: 1, 8>}]} {
    %c0 = arith.constant 0 : index
    %c0_0 = arith.constant 0 : index
    %0 = vector.load %arg2[%c0, %c0_0] : memref<20x18xf32, #tpu.memory_space<vmem>>, vector<20x16xf32>
    %c0_1 = arith.constant 0 : index
    %c16 = arith.constant 16 : index
    %1 = vector.load %arg2[%c0_1, %c16] : memref<20x18xf32, #tpu.memory_space<vmem>>, vector<20x1xf32>
    %c0_2 = arith.constant 0 : index
    %c17 = arith.constant 17 : index
    %2 = vector.load %arg2[%c0_2, %c17] : memref<20x18xf32, #tpu.memory_space<vmem>>, vector<20x1xf32>
    %c0_3 = arith.constant 0 : index
    %3 = memref.load %arg3[%c0_3] : memref<1xf32, #tpu.memory_space<smem>>
    %c0_4 = arith.constant 0 : index
    %c0_5 = arith.constant 0 : index
    %4 = vector.load %arg1[%c0_4, %c0_5] : memref<8x16xf32, #tpu.memory_space<vmem>>, vector<8x16xf32>
    %cst = arith.constant dense<0.000000e+00> : vector<20x8xf32>
    %5 = tpu.matmul %0, %4, %cst {dimension_numbers = #tpu.dot_dimension_numbers<[1], [1], [0], [0], [0, 0, 1, 0], [], []>} : vector<20x16xf32>, vector<8x16xf32>, vector<20x8xf32> -> vector<20x8xf32>
    %6 = vector.broadcast %1 : vector<20x1xf32> to vector<20x8xf32>
    %7 = arith.addf %5, %6 : vector<20x8xf32>
    %8 = math.tanh %7 : vector<20x8xf32>
    %9 = vector.broadcast %2 : vector<20x1xf32> to vector<20x8xf32>
    %10 = arith.mulf %8, %9 : vector<20x8xf32>
    %cst_6 = arith.constant dense<0.000000e+00> : vector<8xf32>
    %11 = vector.multi_reduction <add>, %10, %cst_6 [0] : vector<20x8xf32> to vector<8xf32>
    %12 = vector.shape_cast %11 : vector<8xf32> to vector<1x8xf32>
    %13 = vector.broadcast %3 : f32 to vector<1x8xf32>
    %14 = arith.addf %12, %13 : vector<1x8xf32>
    %c0_7 = arith.constant 0 : index
    %c0_8 = arith.constant 0 : index
    %15 = vector.load %arg4[%c0_7, %c0_8] : memref<1x8xf32, #tpu.memory_space<vmem>>, vector<1x8xf32>
    tpu.vector_store %arg4[%c0_7, %c0_8], %14 {strides = array<i32>} : memref<1x8xf32, #tpu.memory_space<vmem>>, vector<1x8xf32>,
    return
  }
  func.func @transform_0(%arg0: i32) -> (i32, i32) {
    %c0_i32 = arith.constant 0 : i32
    %c0_i32_0 = arith.constant 0 : i32
    return %arg0, %c0_i32 : i32, i32
  }
  func.func @transform_1(%arg0: i32) -> (i32, i32) {
    %c0_i32 = arith.constant 0 : i32
    %c0_i32_0 = arith.constant 0 : i32
    %c0_i32_1 = arith.constant 0 : i32
    return %c0_i32, %c0_i32_0 : i32, i32
  }
  func.func @transform_2(%arg0: i32) -> i32 {
    %c0_i32 = arith.constant 0 : i32
    %c0_i32_0 = arith.constant 0 : i32
    return %c0_i32 : i32
  }
  func.func @transform_3(%arg0: i32) -> (i32, i32) {
    %c0_i32 = arith.constant 0 : i32
    %c0_i32_0 = arith.constant 0 : i32
    return %c0_i32, %arg0 : i32, i32
  }
}

</mosaic_0001>

<bundles_post_ra>
// kernel: tpu_custom_call.1
= control target key start
LH: loop header
LB: loop body
LE: loop exit
PB: predicated region body
PF: predicated region fallthrough
CT: control target
= control target key end

     0   :  { %9 = vsyncpa [#allocation4], 0  ;;  %s358_s0 = inlined_call_operand.hbm [shape: f32[8,16], index: 0, kind: input, shape index: {}]   ;;  %s359_s1 = inlined_call_operand.hbm [shape: f32[20,18], index: 1, kind: input, shape index: {}]   ;;  %s360_s2 = inlined_call_operand.<no memory space> [shape: f32[1], index: 2, kind: input, shape index: {}]   ;;  %s361_s3 = inlined_call_operand.hbm [shape: f32[1,8], index: 3, kind: output, shape index: {}]  }
   0x1   :  { %10 = vsyncpa [#allocation7], 0 }
   0x2   :  { %11 = vsyncpa [#allocation5], 0  ;;  %s309_s12 = smov [#allocation3]   ;;  %s310_s14 = smov [#allocation6]  }
   0x3   :  { %s18_s13 = sshll.u32 %s309_s12, 4  ;;  %s27_s15 = sshll.u32 %s310_s14, 4  ;;  %s19_s13 = int_to_ptr.vmem [resolvable:$true] %s18_s13  ;;  %s28_s15 = int_to_ptr.vmem [resolvable:$true] %s27_s15 }
   0x4   :  { %s251_s16 = scalar_lea.vmem %s19_s13, 128  ;;  %p256_p1 = scmp.lt.s32.totalorder %s19_s13, %s19_s13 }
   0x5   :  { %p252_p0 = scmp.ne.s32.totalorder %s19_s13, %s251_s16  ;;  %p257_p2 = scmp.lt.s32.totalorder %s251_s16, %s251_s16 }
   0x7   :  { %p258_p3 = por %p257_p2, %p256_p1 }
   0x9   :  { %p259_p4 = pnand %p258_p3, %p252_p0 }
   0xb   :  { %262 = shalt.err (!%p259_p4)
}
   0xc   :  { %21 = dma.hbm_to_vmem [thread:$0]  %s358_s0, 128, %s19_s13, [#allocation4]  }
   0xd   :  { %s271_s19 = scalar_lea.vmem %s28_s15, 384  ;;  %p276_p6 = scmp.lt.s32.totalorder %s28_s15, %s28_s15 }
   0xe   :  { %p272_p5 = scmp.ne.s32.totalorder %s28_s15, %s271_s19  ;;  %p277_p7 = scmp.lt.s32.totalorder %s271_s19, %s271_s19 }
  0x10   :  { %p278_p8 = por %p277_p7, %p276_p6 }
  0x12   :  { %p279_p9 = pnand %p278_p8, %p272_p5 }
  0x14   :  { %282 = shalt.err (!%p279_p9)
}
  0x15   :  { %s311_s20 = smov 128   ;;  %s312_s21 = smov 8  }
  0x16   :  { %33 = dma.hbm_to_vmem [thread:$0]  %s359_s1, 384, %s28_s15, [#allocation7], %s311_s20, %s311_s20, %s312_s21  }
  0x17   :  { %303 = dma.done.wait [#allocation4], 128  }
  0x18   :  { %304 = vsyncadd [#allocation4], 4294967168 }
  0x19   :  { %305 = dma.done.wait [#allocation7], 384  }
  0x1a   :  { %306 = vsyncadd [#allocation7], 4294966912  ;;  %v313_v0 = vmov 0.0   ;;  %vm314_vm0 = vmmov 0   ;;  %v315_v1 = vmov 16   ;;  %vm62_vm1 = vcmask 130048  }
  0x1b   :  { %211 = vmatprep.subr.mxu0 %v313_v0  ;;  %222 = vmatprep.subr.mxu1 %v313_v0  ;;  %v46_v2 = vld [vmem:[#allocation3] sm:$0xff]  ;;  %v42_v3 = vld [vmem:[#allocation6] sm:$0xff]  ;;  %v43_v4 = vld [vmem:[#allocation6 + $0x8] sm:$0xff]  ;;  %v316_v6 = vmov 17   ;;  %vm170_vm2 = vcmask 64512   ;;  %vm174_vm3 = vcmask 60416   ;;  %v183_v38 = vstv %s360_s2 }
  0x1c   :  { %213 = vmatprep.mubr.msk.f32.mxu0 %vm314_vm0, %v313_v0  ;;  %216 = vmatprep.mubr.msk.f32.mxu1 %vm314_vm0, %v313_v0  ;;  %v44_v5 = vld [vmem:[#allocation6 + $0x10] sm:$0xf]  ;;  %s317_s24 = smov [#allocation8]   ;;  %vm185_vm4 = vcmask 57344  }
  0x1d   :  { %233 = vset.pattern.permute.xlu0 %v315_v1  ;;  %234 = vset.pattern.permute.xlu1 %v315_v1  ;;  %s193_s25 = sshll.u32 %s317_s24, 4  ;;  %s194_s25 = int_to_ptr.vmem [resolvable:$true] %s193_s25 }
  0x1e   :  { %212 = vmatpush3.xpose.msk.msra.mxu0 %vm62_vm1, %v46_v2  ;;  %223 = vmatpush3.xpose.msk.msra.mxu1 %vm62_vm1, %v46_v2  ;;  %s283_s26 = scalar_lea.vmem %s194_s25, 16  ;;  %s287_s27 = scalar_lea.vmem %s194_s25, 32 }
  0x1f   :  { %49 = vperm.xlu0 %233, %v42_v3   ;;  %59 = vperm.xlu1 %234, %v44_v5   ;;  %p284_p10 = scmp.ne.s32.totalorder %s194_s25, %s283_s26  ;;  %p288_p11 = scmp.lt.s32.totalorder %s194_s25, %s194_s25 }
  0x20   :  { %p289_p12 = scmp.lt.s32.totalorder %s287_s27, %s283_s26 }
  0x21   :  { %214 = vmatmul.mubr.msk.f32.vlgmr.msra.gmra.mxu0 %vm62_vm1, %v42_v3  ;;  %217 = vmatmul.mubr.msk.f32.vlgmr.msra.gmra.mxu1 %vm62_vm1, %v43_v4 }
  0x22   :  { %219 = vmatprep.mubr.msk.f32.mxu1 %vm314_vm0, %v313_v0  ;;  %p290_p13 = por %p289_p12, %p288_p11 }
  0x23   :  { %54 = vperm.xlu0 %233, %v43_v4   ;;  %235 = vset.pattern.permute.xlu1 %v316_v6 }
  0x24   :  { %156 = vperm.xlu1 %235, %v42_v3   ;;  %p291_p0 = pnand %p290_p13, %p284_p10 }
  0x25   :  { %220 = vmatmul.mubr.msk.f32.gmra.mxu1 %vm62_vm1, %v44_v5 }
  0x27   :  { %236 = vset.pattern.permute.xlu0 %v316_v6 }
  0x28   :  { %164 = vperm.xlu1 %235, %v44_v5   ;;  %160 = vperm.xlu0 %236, %v43_v4  }
  0x9a   :  { %v50_v7 = vpop.permute.xlu0 %49  ;;  %v60_v13 = vpop.permute.xlu1 %59 }
  0x9e   :  { %v55_v8 = vpop.permute.xlu0 %54 }
  0x9f   :  { %v157_v19 = vpop.permute.xlu1 %156 }
  0xa3   :  { %v161_v20 = vpop.permute.xlu0 %160  ;;  %v165_v27 = vpop.permute.xlu1 %164 }
  0xe1   :  { %v138_v9 = vpop.f32.mrf.mxu0  ;;  %v143_v10 = vpop.f32.mrf.mxu1 }
  0xe2   :  { %v139_v11 = vadd.f32 %v138_v9, %v50_v7  ;;  %v144_v12 = vadd.f32 %v143_v10, %v55_v8 }
  0xe3   :  { %v215_v14 = vpop.f32.mrf.mxu0  ;;  %v218_v15 = vpop.f32.mrf.mxu1 }
  0xe4   :  { %237 = vtanh.f32 %v139_v11 }
  0xe5   :  { %239 = vtanh.f32 %v144_v12  ;;  %v148_v16 = vpop.f32.mrf.mxu1 }
  0xe6   :  { %v149_v17 = vadd.f32 %v148_v16, %v60_v13 }
  0xe7   :  { %v221_v18 = vpop.f32.mrf.mxu1 }
  0xe8   :  { %241 = vtanh.f32 %v149_v17 }
  0xf1   :  { %v238_v21 = vpop.eup %237 }
  0xf2   :  { %v240_v22 = vpop.eup %239  ;;  %v167_v23 = vmul.f32 %v238_v21, %v157_v19 }
  0xf3   :  { %v168_v24 = vmul.f32 %v240_v22, %v161_v20 }
  0xf4   :  { %v171_v25 = vsel %vm170_vm2, %v167_v23, 0.0 }
  0xf5   :  { %v242_v26 = vpop.eup %241  ;;  %v172_v28 = vsel %vm170_vm2, %v168_v24, 0.0 }
  0xf6   :  { %v169_v29 = vmul.f32 %v242_v26, %v165_v27  ;;  %v173_v30 = vadd.f32 %v172_v28, %v171_v25 }
  0xf8   :  { %v175_v31 = vsel %vm174_vm3, %v169_v29, 0.0 }
  0xf9   :  { %v176_v32 = vadd.f32 %v175_v31, %v173_v30 }
  0xfb   :  { %v177_v33 = vrot.slane %v176_v32, 4 }
  0xfd   :  { %v178_v34 = vadd.f32 %v177_v33, %v176_v32 }
  0xff   :  { %v179_v35 = vrot.slane %v178_v34, 2 }
 0x101   :  { %v180_v36 = vadd.f32 %v179_v35, %v178_v34 }
 0x103   :  { %v181_v37 = vrot.slane %v180_v36, 1 }
 0x105   :  { %v182_v39 = vadd.f32 %v181_v37, %v180_v36 }
 0x107   :  { %v184_v40 = vadd.f32 %v183_v38, %v182_v39 }
 0x109   :  { %186 = vst.msk [vmem:[#allocation8] sm:$0x1] %vm185_vm4, %v184_v40 }
 0x10a   :  { %294 = shalt.err (!%p291_p0)
}
 0x10b   :  { %196 = dma.vmem_to_hbm [thread:$0]  %s194_s25, 16, %s361_s3, [#allocation5]  }
 0x10c   :  { %307 = dma.done.wait [#allocation5], 16  }
 0x10d   :  { %308 = vsyncadd [#allocation5], 4294967280 }
 0x10e   :  { %200 = vsyncpa [#allocation4], 1 }
 0x10f   :  { %201 = vsyncpa [#allocation7], 1 }
 0x110   :  { %202 = vsyncpa [#allocation5], 1 }

</bundles_post_ra>
